<compile_context>
chip_gen: v5e
topology: v5e:2x2
jax: 0.10.0
libtpu: 0.0.40
codegen_flags: <defaults>
</compile_context>

<pallas_src>
import jax
import jax.numpy as jnp
from jax import lax
from jax.experimental import pallas as pl
from jax.experimental.pallas import tpu as pltpu


def _round_up(n, m):
    return ((n + m - 1) // m) * m


def _make_mlp_kernel(d_out, compute_dtype, approx_recip):
    def mlp_kernel(x_ref, w1_ref, b1_ref, w2_ref, b2_ref, o_ref):
        # fc1: MXU matmul (f32 accumulate) + bias + ReLU, all epilogue in f32.
        h = jnp.dot(x_ref[...], w1_ref[...],
                    preferred_element_type=jnp.float32) + b1_ref[...]
        h = jnp.maximum(h, 0.0)

        # fc2: cast activations to the MXU compute dtype, accumulate in f32.
        logits = jnp.dot(h.astype(compute_dtype), w2_ref[...],
                         preferred_element_type=jnp.float32) + b2_ref[...]

        # Exclude zero-padded output columns from the softmax.
        col = lax.broadcasted_iota(jnp.int32, logits.shape, 1)
        logits = jnp.where(col < d_out, logits, -jnp.inf)

        # Numerically-stable softmax along the last (lane) dim.
        m = jnp.max(logits, axis=-1, keepdims=True)
        e = jnp.exp(logits - m)
        denom = jnp.sum(e, axis=-1, keepdims=True)
        o_ref[...] = e * pl.reciprocal(denom, approx=approx_recip)

    return mlp_kernel


def mlp_forward(x, w1, b1, w2, b2, *, compute_dtype=jnp.bfloat16, tile_b=512):
    """Fused MLP forward: softmax(relu(x @ w1 + b1) @ w2 + b2, axis=-1).

    x:  (B, D_in) f32
    w1: (D_in, H)    b1: (H,) or (1, H)
    w2: (H, D_out)   b2: (D_out,) or (1, D_out)
    Returns (B, D_out) f32.
    """
    B, d_in = x.shape
    h_dim = w1.shape[1]
    d_out = w2.shape[1]

    # Lane-dense feature dims.
    d_in_p = _round_up(d_in, 128)
    h_p = _round_up(h_dim, 128)
    d_out_p = _round_up(d_out, 128)

    # Batch tile: multiple of 8 sublanes, capped for VMEM friendliness.
    tb = _round_up(min(tile_b, max(8, _round_up(B, 8))), 8)
    b_p = _round_up(B, tb)

    f32 = jnp.float32
    # Host-side zero padding + dtype cast (halves HBM traffic when bf16).
    xp = jnp.zeros((b_p, d_in_p), compute_dtype).at[:B, :d_in].set(
        x.astype(compute_dtype))
    w1p = jnp.zeros((d_in_p, h_p), compute_dtype).at[:d_in, :h_dim].set(
        w1.astype(compute_dtype))
    w2p = jnp.zeros((h_p, d_out_p), compute_dtype).at[:h_dim, :d_out].set(
        w2.astype(compute_dtype))
    b1p = jnp.zeros((1, h_p), f32).at[0, :h_dim].set(b1.reshape(-1).astype(f32))
    b2p = jnp.zeros((1, d_out_p), f32).at[0, :d_out].set(b2.reshape(-1).astype(f32))

    kernel = _make_mlp_kernel(
        d_out, compute_dtype, approx_recip=(compute_dtype != jnp.float32))

    out_p = pl.pallas_call(
        kernel,
        out_shape=jax.ShapeDtypeStruct((b_p, d_out_p), jnp.float32),
        grid=(b_p // tb,),
        in_specs=[
            pl.BlockSpec((tb, d_in_p), lambda i: (i, 0)),       # x tile per step
            pl.BlockSpec((d_in_p, h_p), lambda i: (0, 0)),      # W1 resident
            pl.BlockSpec((1, h_p), lambda i: (0, 0)),           # b1 resident
            pl.BlockSpec((h_p, d_out_p), lambda i: (0, 0)),     # W2 resident
            pl.BlockSpec((1, d_out_p), lambda i: (0, 0)),       # b2 resident
        ],
        out_specs=pl.BlockSpec((tb, d_out_p), lambda i: (i, 0)),
        compiler_params=pltpu.CompilerParams(
            dimension_semantics=("parallel",)),
    )(xp, w1p, b1p, w2p, b2p)

    return out_p[:B, :d_out]


def reference_forward(x, w1, b1, w2, b2):
    h = jnp.maximum(x @ w1 + b1, 0.0)
    logits = h @ w2 + b2
    return jax.nn.softmax(logits, axis=-1)


if __name__ == "__main__":
    input_dim, hidden_dim, output_dim = 10, 20, 10
    batch = 2

    key = jax.random.PRNGKey(0)
    kx, k1, k2, k3, k4 = jax.random.split(key, 5)

    # Deterministic synthetic params matching the PyTorch init: N(0, 0.01).
    x = jax.random.normal(kx, (batch, input_dim), dtype=jnp.float32)
    w1 = 0.01 * jax.random.normal(k1, (input_dim, hidden_dim), dtype=jnp.float32)
    b1 = 0.01 * jax.random.normal(k2, (hidden_dim,), dtype=jnp.float32)
    w2 = 0.01 * jax.random.normal(k3, (hidden_dim, output_dim), dtype=jnp.float32)
    b2 = 0.01 * jax.random.normal(k4, (output_dim,), dtype=jnp.float32)

    ref = reference_forward(x, w1, b1, w2, b2)

    # Strict path: f32 MXU inputs, exact reciprocal -> matches reference tightly.
    out_f32 = jax.block_until_ready(
        mlp_forward(x, w1, b1, w2, b2, compute_dtype=jnp.float32))
    assert out_f32.shape == (batch, output_dim)
    assert jnp.allclose(out_f32, ref, atol=1e-5, rtol=1e-5), "f32 mismatch vs reference"
    assert jnp.allclose(jnp.sum(out_f32, axis=-1), 1.0, atol=1e-5), "softmax rows must sum to 1"

    # Perf path: bf16 MXU inputs, f32 accumulation (v6e/v7x MXU sweet spot).
    out_bf16 = jax.block_until_ready(
        mlp_forward(x, w1, b1, w2, b2, compute_dtype=jnp.bfloat16))
    assert out_bf16.shape == (batch, output_dim)
    assert jnp.allclose(out_bf16, ref, atol=5e-3, rtol=5e-3), "bf16 mismatch vs reference"

    # NOTE: the PyTorch module's list/tensor conversion and .squeeze(0).tolist()
    # are host-side glue; the numeric forward pass is reproduced by the kernel.
    print("KERNEL_OK")
</pallas_src>

<mosaic_0001>
module attributes {stable_mosaic.version = 11 : i64} {
  func.func @mlp_kernel(%arg0: i32, %arg1: memref<8x128xf32, #tpu.memory_space<vmem>>, %arg2: memref<128x128xf32, #tpu.memory_space<vmem>>, %arg3: memref<1x128xf32, #tpu.memory_space<vmem>>, %arg4: memref<128x128xf32, #tpu.memory_space<vmem>>, %arg5: memref<1x128xf32, #tpu.memory_space<vmem>>, %arg6: memref<8x128xf32, #tpu.memory_space<vmem>>) attributes {dimension_semantics = [#tpu.dimension_semantics<parallel>], iteration_bounds = array<i64: 1>, scalar_prefetch = 0 : i64, scratch_operands = 0 : i64, tpu.core_type = #tpu.core_type<tc>, window_params = [{transform_indices = @transform_0, window_bounds = array<i64: 8, 128>}, {pipeline_mode = #tpu.pipeline_mode<synchronous>, transform_indices = @transform_1, window_bounds = array<i64: 128, 128>}, {pipeline_mode = #tpu.pipeline_mode<synchronous>, transform_indices = @transform_2, window_bounds = array<i64: 1, 128>}, {pipeline_mode = #tpu.pipeline_mode<synchronous>, transform_indices = @transform_3, window_bounds = array<i64: 128, 128>}, {pipeline_mode = #tpu.pipeline_mode<synchronous>, transform_indices = @transform_4, window_bounds = array<i64: 1, 128>}, {transform_indices = @transform_5, window_bounds = array<i64: 8, 128>}]} {
    %c0 = arith.constant 0 : index
    %c0_0 = arith.constant 0 : index
    %0 = vector.load %arg1[%c0, %c0_0] : memref<8x128xf32, #tpu.memory_space<vmem>>, vector<8x128xf32>
    %c0_1 = arith.constant 0 : index
    %c0_2 = arith.constant 0 : index
    %1 = vector.load %arg2[%c0_1, %c0_2] : memref<128x128xf32, #tpu.memory_space<vmem>>, vector<128x128xf32>
    %cst = arith.constant dense<0.000000e+00> : vector<8x128xf32>
    %2 = tpu.matmul %0, %1, %cst {dimension_numbers = #tpu.dot_dimension_numbers<[1], [0], [0], [1], [0, 0, 1, 1], [], []>} : vector<8x128xf32>, vector<128x128xf32>, vector<8x128xf32> -> vector<8x128xf32>
    %c0_3 = arith.constant 0 : index
    %c0_4 = arith.constant 0 : index
    %3 = vector.load %arg3[%c0_3, %c0_4] : memref<1x128xf32, #tpu.memory_space<vmem>>, vector<1x128xf32>
    %4 = vector.broadcast %3 : vector<1x128xf32> to vector<8x128xf32>
    %5 = arith.addf %2, %4 : vector<8x128xf32>
    %cst_5 = arith.constant 0.000000e+00 : f32
    %6 = vector.broadcast %cst_5 : f32 to vector<8x128xf32>
    %7 = arith.maximumf %5, %6 : vector<8x128xf32>
    %c0_6 = arith.constant 0 : index
    %c0_7 = arith.constant 0 : index
    %8 = vector.load %arg4[%c0_6, %c0_7] : memref<128x128xf32, #tpu.memory_space<vmem>>, vector<128x128xf32>
    %cst_8 = arith.constant dense<0.000000e+00> : vector<8x128xf32>
    %9 = tpu.matmul %7, %8, %cst_8 {dimension_numbers = #tpu.dot_dimension_numbers<[1], [0], [0], [1], [0, 0, 1, 1], [], []>} : vector<8x128xf32>, vector<128x128xf32>, vector<8x128xf32> -> vector<8x128xf32>
    %c0_9 = arith.constant 0 : index
    %c0_10 = arith.constant 0 : index
    %10 = vector.load %arg5[%c0_9, %c0_10] : memref<1x128xf32, #tpu.memory_space<vmem>>, vector<1x128xf32>
    %11 = vector.broadcast %10 : vector<1x128xf32> to vector<8x128xf32>
    %12 = arith.addf %9, %11 : vector<8x128xf32>
    %13 = tpu.iota {dimensions = array<i32: 1>} : vector<8x128xi32>
    %c10_i32 = arith.constant 10 : i32
    %14 = vector.broadcast %c10_i32 : i32 to vector<8x128xi32>
    %15 = arith.cmpi slt, %13, %14 : vector<8x128xi32>
    %cst_11 = arith.constant 0xFF800000 : f32
    %16 = vector.broadcast %cst_11 : f32 to vector<8x128xf32>
    %17 = arith.select %15, %12, %16 : vector<8x128xi1>, vector<8x128xf32>
    %cst_12 = arith.constant dense<0xFF800000> : vector<8xf32>
    %18 = vector.multi_reduction <maximumf>, %17, %cst_12 [1] : vector<8x128xf32> to vector<8xf32>
    %19 = vector.shape_cast %18 : vector<8xf32> to vector<8x1xf32>
    %20 = vector.broadcast %19 : vector<8x1xf32> to vector<8x128xf32>
    %21 = arith.subf %17, %20 : vector<8x128xf32>
    %22 = math.exp %21 : vector<8x128xf32>
    %cst_13 = arith.constant dense<0.000000e+00> : vector<8xf32>
    %23 = vector.multi_reduction <add>, %22, %cst_13 [1] : vector<8x128xf32> to vector<8xf32>
    %24 = vector.shape_cast %23 : vector<8xf32> to vector<8x1xf32>
    %25 = tpu.reciprocal %24 : vector<8x1xf32> -> vector<8x1xf32>
    %26 = vector.broadcast %25 : vector<8x1xf32> to vector<8x128xf32>
    %27 = arith.mulf %22, %26 : vector<8x128xf32>
    %c0_14 = arith.constant 0 : index
    %c0_15 = arith.constant 0 : index
    %28 = vector.load %arg6[%c0_14, %c0_15] : memref<8x128xf32, #tpu.memory_space<vmem>>, vector<8x128xf32>
    tpu.vector_store %arg6[%c0_14, %c0_15], %27 {strides = array<i32>} : memref<8x128xf32, #tpu.memory_space<vmem>>, vector<8x128xf32>,
    return
  }
  func.func @transform_0(%arg0: i32) -> (i32, i32) {
    %c0_i32 = arith.constant 0 : i32
    %c0_i32_0 = arith.constant 0 : i32
    return %arg0, %c0_i32 : i32, i32
  }
  func.func @transform_1(%arg0: i32) -> (i32, i32) {
    %c0_i32 = arith.constant 0 : i32
    %c0_i32_0 = arith.constant 0 : i32
    %c0_i32_1 = arith.constant 0 : i32
    return %c0_i32, %c0_i32_0 : i32, i32
  }
  func.func @transform_2(%arg0: i32) -> (i32, i32) {
    %c0_i32 = arith.constant 0 : i32
    %c0_i32_0 = arith.constant 0 : i32
    %c0_i32_1 = arith.constant 0 : i32
    return %c0_i32, %c0_i32_0 : i32, i32
  }
  func.func @transform_3(%arg0: i32) -> (i32, i32) {
    %c0_i32 = arith.constant 0 : i32
    %c0_i32_0 = arith.constant 0 : i32
    %c0_i32_1 = arith.constant 0 : i32
    return %c0_i32, %c0_i32_0 : i32, i32
  }
  func.func @transform_4(%arg0: i32) -> (i32, i32) {
    %c0_i32 = arith.constant 0 : i32
    %c0_i32_0 = arith.constant 0 : i32
    %c0_i32_1 = arith.constant 0 : i32
    return %c0_i32, %c0_i32_0 : i32, i32
  }
  func.func @transform_5(%arg0: i32) -> (i32, i32) {
    %c0_i32 = arith.constant 0 : i32
    %c0_i32_0 = arith.constant 0 : i32
    return %arg0, %c0_i32 : i32, i32
  }
}

</mosaic_0001>

<bundles_post_ra>
// kernel: tpu_custom_call.1
= control target key start
LH: loop header
LB: loop body
LE: loop exit
PB: predicated region body
PF: predicated region fallthrough
CT: control target
= control target key end

     0   :  { %10 = vsyncpa [#allocation3], 0  ;;  %s361_s0 = inlined_call_operand.hbm [shape: f32[8,128], index: 0, kind: input, shape index: {}]   ;;  %s362_s1 = inlined_call_operand.hbm [shape: f32[128,128], index: 1, kind: input, shape index: {}]   ;;  %s363_s2 = inlined_call_operand.vmem [shape: f32[1,128], index: 2, kind: input, shape index: {}]   ;;  %s364_s3 = inlined_call_operand.hbm [shape: f32[128,128], index: 3, kind: input, shape index: {}]   ;;  %s365_s4 = inlined_call_operand.vmem [shape: f32[1,128], index: 4, kind: input, shape index: {}]   ;;  %s366_s5 = inlined_call_operand.hbm [shape: f32[8,128], index: 5, kind: output, shape index: {}]  }
   0x1   :  { %11 = vsyncpa [#allocation6], 0  ;;  %s28_s20 = sshll.u32 %s362_s1, 4  ;;  %s29_s20 = int_to_ptr.hbm [resolvable:$true] %s28_s20 }
   0x2   :  { %12 = vsyncpa [#allocation4], 0  ;;  %s307_s21 = smov [#allocation5]   ;;  %s18_s25 = sshll.u32 %s361_s0, 4  ;;  %s19_s25 = int_to_ptr.hbm [resolvable:$true] %s18_s25 }
   0x3   :  { %s30_s22 = sshll.u32 %s307_s21, 4  ;;  %s308_s26 = smov 128   ;;  %s31_s22 = int_to_ptr.vmem [resolvable:$true] %s30_s22 }
   0x4   :  { %s309_s27 = smov 8   ;;  %s310_s28 = smov [#allocation2]  }
   0x5   :  { %36 = dma.hbm_to_vmem [thread:$0]  %s29_s20, 2048, %s31_s22, [#allocation6], %s308_s26, %s308_s26, %s309_s27  }
   0x6   :  { %s20_s29 = sshll.u32 %s310_s28, 4  ;;  %s43_s7 = sshll.u32 %s364_s3, 4  ;;  %s21_s29 = int_to_ptr.vmem [resolvable:$true] %s20_s29  ;;  %s44_s7 = int_to_ptr.hbm [resolvable:$true] %s43_s7 }
   0x7   :  { %23 = dma.hbm_to_vmem [thread:$0]  %s19_s25, 128, %s21_s29, [#allocation3]  }
   0x8   :  { %s311_s1 = smov [#allocation7]  }
   0x9   :  { %s45_s8 = sshll.u32 %s311_s1, 4  ;;  %s46_s8 = int_to_ptr.vmem [resolvable:$true] %s45_s8 }
   0xa   :  { %51 = dma.hbm_to_vmem [thread:$0]  %s44_s7, 2048, %s46_s8, [#allocation6], %s308_s26, %s308_s26, %s309_s27  }
   0xb   :  { %301 = dma.done.wait [#allocation3], 128  }
   0xc   :  { %302 = vsyncadd [#allocation3], 4294967168 }
   0xd   :  { %303 = dma.done.wait [#allocation6], 4096  }
   0xe   :  { %304 = vsyncadd [#allocation6], 4294963200  ;;  %v82_v0 = vld [vmem:[#allocation5 + $0x78] sm:$0xff]  ;;  %v81_v1 = vld [vmem:[#allocation5 + $0x70] sm:$0xff]  ;;  %v148_v37 = vlaneseq  ;;  %s182_s13 = sshll.u32 %s366_s5, 4  ;;  %s183_s13 = int_to_ptr.hbm [resolvable:$true] %s182_s13 }
   0xf   :  { %87 = vmatpush.msra.mxu0 %v82_v0  ;;  %v80_v2 = vld [vmem:[#allocation5 + $0x68] sm:$0xff]  ;;  %v79_v3 = vld [vmem:[#allocation5 + $0x60] sm:$0xff]  ;;  %v123_v4 = vld [vmem:[#allocation7 + $0x78] sm:$0xff] }
  0x10   :  { %v78_v5 = vld [vmem:[#allocation5 + $0x58] sm:$0xff]  ;;  %128 = vmatpush.msra.mxu1 %v123_v4  ;;  %v122_v6 = vld [vmem:[#allocation7 + $0x70] sm:$0xff]  ;;  %v121_v7 = vld [vmem:[#allocation7 + $0x68] sm:$0xff]  ;;  %v149_v38 = vand.u32 127, %v148_v37 }
  0x11   :  { %88 = vmatpush.msra.mxu0 %v81_v1  ;;  %v77_v8 = vld [vmem:[#allocation5 + $0x50] sm:$0xff]  ;;  %v120_v9 = vld [vmem:[#allocation7 + $0x60] sm:$0xff]  ;;  %v76_v10 = vld [vmem:[#allocation5 + $0x48] sm:$0xff] }
  0x12   :  { %129 = vmatpush.msra.mxu1 %v122_v6  ;;  %v119_v11 = vld [vmem:[#allocation7 + $0x58] sm:$0xff]  ;;  %v75_v12 = vld [vmem:[#allocation5 + $0x40] sm:$0xff]  ;;  %v118_v13 = vld [vmem:[#allocation7 + $0x50] sm:$0xff]  ;;  %vm150_vm0 = vcmp.lt.s32.totalorder %v149_v38, 10 }
  0x13   :  { %89 = vmatpush.msra.mxu0 %v80_v2  ;;  %v74_v14 = vld [vmem:[#allocation5 + $0x38] sm:$0xff]  ;;  %v117_v15 = vld [vmem:[#allocation7 + $0x48] sm:$0xff]  ;;  %v73_v16 = vld [vmem:[#allocation5 + $0x30] sm:$0xff] }
  0x14   :  { %130 = vmatpush.msra.mxu1 %v121_v7  ;;  %v116_v17 = vld [vmem:[#allocation7 + $0x40] sm:$0xff]  ;;  %v72_v18 = vld [vmem:[#allocation5 + $0x28] sm:$0xff]  ;;  %v115_v19 = vld [vmem:[#allocation7 + $0x38] sm:$0xff] }
  0x15   :  { %90 = vmatpush.msra.mxu0 %v79_v3  ;;  %v71_v20 = vld [vmem:[#allocation5 + $0x20] sm:$0xff]  ;;  %v114_v21 = vld [vmem:[#allocation7 + $0x30] sm:$0xff]  ;;  %v70_v22 = vld [vmem:[#allocation5 + $0x18] sm:$0xff] }
  0x16   :  { %131 = vmatpush.msra.mxu1 %v120_v9  ;;  %v113_v23 = vld [vmem:[#allocation7 + $0x28] sm:$0xff]  ;;  %v69_v24 = vld [vmem:[#allocation5 + $0x10] sm:$0xff]  ;;  %v112_v25 = vld [vmem:[#allocation7 + $0x20] sm:$0xff] }
  0x17   :  { %91 = vmatpush.msra.mxu0 %v78_v5  ;;  %v68_v26 = vld [vmem:[#allocation5 + $0x8] sm:$0xff]  ;;  %v111_v27 = vld [vmem:[#allocation7 + $0x18] sm:$0xff]  ;;  %v67_v28 = vld [vmem:[#allocation5] sm:$0xff] }
  0x18   :  { %132 = vmatpush.msra.mxu1 %v119_v11  ;;  %v66_v29 = vld [vmem:[#allocation2] sm:$0xff]  ;;  %v110_v30 = vld [vmem:[#allocation7 + $0x10] sm:$0xff]  ;;  %v109_v31 = vld [vmem:[#allocation7 + $0x8] sm:$0xff] }
  0x19   :  { %92 = vmatpush.msra.mxu0 %v77_v8  ;;  %v108_v32 = vld [vmem:[#allocation7] sm:$0xff]  ;;  %v199_v33 = vld [vmem:[%s363_s2] ss:$0 sm:$0xff]  ;;  %s312_s2 = smov [#allocation8]  }
  0x1a   :  { %133 = vmatpush.msra.mxu1 %v118_v13  ;;  %v200_v39 = vld [vmem:[%s365_s4] ss:$0 sm:$0xff]  ;;  %s180_s4 = sshll.u32 %s312_s2, 4  ;;  %s181_s4 = int_to_ptr.vmem [resolvable:$true] %s180_s4 }
  0x1b   :  { %93 = vmatpush.msra.mxu0 %v76_v10 }
  0x1c   :  { %134 = vmatpush.msra.mxu1 %v117_v15 }
  0x1d   :  { %94 = vmatpush.msra.mxu0 %v75_v12 }
  0x1e   :  { %135 = vmatpush.msra.mxu1 %v116_v17 }
  0x1f   :  { %95 = vmatpush.msra.mxu0 %v74_v14 }
  0x20   :  { %136 = vmatpush.msra.mxu1 %v115_v19 }
  0x21   :  { %96 = vmatpush.msra.mxu0 %v73_v16 }
  0x22   :  { %137 = vmatpush.msra.mxu1 %v114_v21 }
  0x23   :  { %97 = vmatpush.msra.mxu0 %v72_v18 }
  0x24   :  { %138 = vmatpush.msra.mxu1 %v113_v23 }
  0x25   :  { %98 = vmatpush.msra.mxu0 %v71_v20 }
  0x26   :  { %139 = vmatpush.msra.mxu1 %v112_v25 }
  0x27   :  { %99 = vmatpush.msra.mxu0 %v70_v22 }
  0x28   :  { %140 = vmatpush.msra.mxu1 %v111_v27 }
  0x29   :  { %100 = vmatpush.msra.mxu0 %v69_v24 }
  0x2a   :  { %141 = vmatpush.msra.mxu1 %v110_v30 }
  0x2b   :  { %101 = vmatpush.msra.mxu0 %v68_v26 }
  0x2c   :  { %142 = vmatpush.msra.mxu1 %v109_v31 }
  0x2d   :  { %102 = vmatpush.msra.mxu0 %v67_v28 }
  0x2e   :  { %103 = vmatmul.f32.vlgmr.msra.gmra.mxu0 %v66_v29  ;;  %143 = vmatpush.msra.mxu1 %v108_v32 }
  0xab   :  { %v104_v34 = vpop.f32.mrf.mxu0 }
  0xac   :  { %v105_v35 = vadd.f32 %v199_v33, %v104_v34 }
  0xae   :  { %v107_v36 = vmax.f32 %v105_v35, 0.0 }
  0xb0   :  { %144 = vmatmul.f32.vlgmr.msra.gmra.mxu1 %v107_v36 }
 0x12d   :  { %v145_v40 = vpop.f32.mrf.mxu1 }
 0x12e   :  { %v146_v41 = vadd.f32 %v200_v39, %v145_v40 }
 0x130   :  { %v151_v42 = vsel %vm150_vm0, %v146_v41, -inf }
 0x131   :  { %152 = vmax.xlane.f32.xlu0 %v151_v42 }
 0x1a4   :  { %v153_v43 = vpop.xlane.xlu0 %152 }
 0x1a5   :  { %v154_v44 = vsub.f32 %v151_v42, %v153_v43 }
 0x1a7   :  { %v155_v45 = vmul.f32 1.442695, %v154_v44 }
 0x1a9   :  { %201 = vpow2.f32 %v155_v45 }
 0x1af   :  { %v202_v46 = vpop.eup %201 }
 0x1b0   :  { %157 = vadd.xlane.f32.xlu0 %v202_v46 }
 0x223   :  { %v158_v47 = vpop.xlane.xlu0 %157 }
 0x224   :  { %203 = vrcp.f32 %v158_v47  ;;  %v170_v51 = vand.u32 2147483648, %v158_v47  ;;  %v168_v53 = vand.u32 2147483647, %v158_v47  ;;  %vm164_vm2 = vweird.f32 %v158_v47 }
 0x226   :  { %v171_v55 = vor.u32 1.1754944e-38, %v170_v51  ;;  %vm169_vm4 = vcmp.eq.f32.partialorder %v168_v53, 8.507059e+37 }
 0x22a   :  { %v204_v48 = vpop.eup %203 }
 0x22b   :  { %v160_v49 = vmul.f32 %v204_v48, %v158_v47  ;;  %vm165_vm1 = vweird.f32 %v204_v48 }
 0x22c   :  { %vm166_vm3 = vmor %vm164_vm2, %vm165_vm1 }
 0x22d   :  { %v161_v50 = vsub.f32 1.0, %v160_v49 }
 0x22f   :  { %v162_v52 = vmul.f32 %v204_v48, %v161_v50 }
 0x231   :  { %v163_v54 = vadd.f32 %v204_v48, %v162_v52 }
 0x233   :  { %v167_v56 = vsel %vm166_vm3, %v204_v48, %v163_v54 }
 0x234   :  { %v172_v57 = vsel %vm169_vm4, %v171_v55, %v167_v56 }
 0x235   :  { %v173_v58 = vmul.f32 %v202_v46, %v172_v57 }
 0x237   :  { %174 = vst [vmem:[#allocation8] sm:$0xff] %v173_v58 }
 0x238   :  { %185 = dma.vmem_to_hbm [thread:$0]  %s181_s4, 128, %s183_s13, [#allocation4]  }
 0x239   :  { %305 = dma.done.wait [#allocation4], 128  }
 0x23a   :  { %306 = vsyncadd [#allocation4], 4294967168 }
 0x23b   :  { %190 = vsyncpa [#allocation3], 1 }
 0x23c   :  { %191 = vsyncpa [#allocation6], 1 }
 0x23d   :  { %192 = vsyncpa [#allocation4], 1 }

</bundles_post_ra>
